<compile_context>
chip_gen: v7x
topology: tpu7x:2x2x1
jax: 0.10.0
libtpu: 0.0.40
codegen_flags: <defaults>
</compile_context>

<pallas_src>
import jax
import jax.numpy as jnp
from jax.experimental import pallas as pl
from jax.experimental.pallas import tpu as pltpu

_LANE = 128  # lane width (last-dim granularity)


def _round_up(x, m):
    return ((x + m - 1) // m) * m


def _pad2d(a, rows, cols, dtype):
    a = a.astype(dtype)
    if a.shape == (rows, cols):
        return a                     # skip no-op pads (hot-path friendly)
    return jnp.pad(a, ((0, rows - a.shape[0]), (0, cols - a.shape[1])))


def _vmem_ceiling_bytes():
    """Generation-aware VMEM ceiling (leaves compiler headroom)."""
    phys = 128 * 1024 * 1024
    try:
        phys = int(pltpu.get_tpu_info().vmem_capacity_bytes)
    except Exception:
        pass
    if phys <= 64 * 1024 * 1024:      # v7x-class TensorCore (64 MiB VMEM)
        return 56 * 1024 * 1024
    return 100 * 1024 * 1024          # v5e / v6e (128 MiB physical)


def _make_mlp_kernel(tile_b, chunk_b):
    """Fused 3-layer MLP over one (tile_b, *) batch tile, chunked by rows."""
    n_chunks = tile_b // chunk_b

    def kernel(x_ref, w1_ref, b1_ref, w2_ref, b2_ref, w3_ref, o_ref):
        def one_chunk(r):
            x = x_ref[pl.ds(r, chunk_b), :]
            # layer 1: f32 MXU accumulate, f32 bias + tanh epilogue
            h = jnp.tanh(
                jnp.dot(x, w1_ref[...], preferred_element_type=jnp.float32)
                + b1_ref[...])
            # layer 2
            h = jnp.tanh(
                jnp.dot(h.astype(w2_ref.dtype), w2_ref[...],
                        preferred_element_type=jnp.float32)
                + b2_ref[...])
            # layer 3 (no bias); lane-dense unmasked store
            o_ref[pl.ds(r, chunk_b), :] = jnp.dot(
                h.astype(w3_ref.dtype), w3_ref[...],
                preferred_element_type=jnp.float32).astype(o_ref.dtype)

        if n_chunks == 1:
            one_chunk(0)
        else:
            def body(j, carry):
                one_chunk(pl.multiple_of(j * chunk_b, chunk_b))
                return carry
            jax.lax.fori_loop(0, n_chunks, body, 0, unroll=True)

    return kernel


def make_mlp(w1, b1, w2, b2, w3, *, compute_dtype=jnp.bfloat16,
             out_dtype=jnp.float32, tile_b=None):
    """Build forward(x) = tanh(tanh(x@w1+b1)@w2+b2)@w3.

    Weights/biases are padded and cast to the MXU operand dtype exactly once
    here; the returned forward() only pads/casts x per call.
    Shapes: w*: [in, out]; b*: [1, out]; x: [B, d_in] -> [B, d_out] out_dtype.
    """
    d_in, h_dim = w1.shape
    d_out = w3.shape[1]

    compute_dtype = jnp.dtype(compute_dtype)
    out_dtype = jnp.dtype(out_dtype)
    in_sz = compute_dtype.itemsize
    out_sz = out_dtype.itemsize
    # Sublane packing: f32 -> (8,128), bf16 -> (16,128), int8/fp8 -> (32,128).
    gran = max(8, 32 // in_sz)

    # Lane-dense padding of every feature dimension (zero padding is inert).
    d_in_p = _round_up(d_in, _LANE)
    h_p = _round_up(h_dim, _LANE)
    d_out_p = _round_up(d_out, _LANE)

    w1p = _pad2d(w1, d_in_p, h_p, compute_dtype)
    w2p = _pad2d(w2, h_p, h_p, compute_dtype)
    w3p = _pad2d(w3, h_p, d_out_p, compute_dtype)
    b1p = _pad2d(b1, 1, h_p, jnp.float32)   # bias / epilogue stay f32
    b2p = _pad2d(b2, 1, h_p, jnp.float32)

    ceiling = _vmem_ceiling_bytes()
    two_cores_likely = ceiling < (64 * 1024 * 1024)   # v7x heuristic

    w_bytes = (d_in_p * h_p + h_p * h_p + h_p * d_out_p) * in_sz + 2 * h_p * 4
    if w_bytes > int(0.9 * ceiling):
        # TODO(synk): add a second "arbitrary" grid axis over hidden/output
        # chunks with an f32 VMEM accumulator instead of full weight residency
        # for very large hidden dims.
        raise ValueError(
            f"Padded MLP weights ({w_bytes} B) exceed the VMEM-resident "
            f"budget (~{ceiling} B); reduce hidden_dim or add weight tiling.")

    def forward(x):
        B = x.shape[0]

        # ---- batch tile selection -------------------------------------
        if tile_b is None:
            max_tile = 512 if two_cores_likely else 1024
            tb = min(max_tile, _round_up(B, gran))
            if two_cores_likely and B > 2 * gran:
                # keep both v7x TensorCores busy: >= 2 parallel grid steps
                tb = min(tb, _round_up(pl.cdiv(B, 2), gran))
        else:
            tb = tile_b
        tb = _round_up(tb, gran)
        b_p = _round_up(B, tb)
        grid = (b_p // tb,)

        # Intra-tile row chunk: overlap tanh (EUP) with the next chunk's
        # matmuls (MXU) and bound the live f32 intermediate.
        if tb > 256 and tb % 256 == 0:
            chunk_b = 256
        elif tb > 256 and tb % 128 == 0:
            chunk_b = 128
        else:
            chunk_b = tb

        xp = _pad2d(x, b_p, d_in_p, compute_dtype)

        # VMEM budget: single-buffered weights + double-buffered x/out tiles
        # + f32 intermediates, plus slack.
        io_bytes = 2 * tb * (d_in_p * in_sz + d_out_p * out_sz)
        scratch_bytes = 3 * chunk_b * h_p * 4
        vmem_need = int(1.25 * (w_bytes + io_bytes + scratch_bytes)) + (4 << 20)
        vmem_limit = max(16 << 20, min(ceiling, vmem_need))

        cost = pl.CostEstimate(
            flops=2 * B * (d_in * h_dim + h_dim * h_dim + h_dim * d_out),
            transcendentals=2 * B * h_dim,
            bytes_accessed=(x.size + w1p.size + w2p.size + w3p.size) * in_sz
            + (b1p.size + b2p.size) * 4 + B * d_out * out_sz)

        kernel = _make_mlp_kernel(tb, chunk_b)

        def run(single_buffer_weights):
            res_kw = {}
            if single_buffer_weights:
                # Constant index_map => DMA'd once; no need to double-buffer.
                res_kw["pipeline_mode"] = pl.Buffered(1)

            def resident(rows, cols):
                return pl.BlockSpec((rows, cols), lambda i: (0, 0), **res_kw)

            def stream(cols):
                return pl.BlockSpec((tb, cols), lambda i: (i, 0))

            return pl.pallas_call(
                kernel,
                out_shape=jax.ShapeDtypeStruct((b_p, d_out_p), out_dtype),
                grid=grid,
                in_specs=[
                    stream(d_in_p),            # x  : streamed, double-buffered
                    resident(d_in_p, h_p),     # w1 : VMEM-resident
                    resident(1, h_p),          # b1
                    resident(h_p, h_p),        # w2
                    resident(1, h_p),          # b2
                    resident(h_p, d_out_p),    # w3
                ],
                out_specs=stream(d_out_p),
                compiler_params=pltpu.CompilerParams(
                    dimension_semantics=("parallel",),
                    vmem_limit_bytes=vmem_limit),
                cost_estimate=cost,
            )(xp, w1p, b1p, w2p, b2p, w3p)

        try:
            out_padded = run(True)
        except Exception:
            # Fallback for JAX versions without BlockSpec.pipeline_mode.
            out_padded = run(False)

        return out_padded[:B, :d_out]

    return forward


def mlp_forward(x, w1, b1, w2, b2, w3, *, compute_dtype=jnp.bfloat16,
                out_dtype=jnp.float32, tile_b=None):
    """Convenience one-shot wrapper (pads/casts weights on every call)."""
    return make_mlp(w1, b1, w2, b2, w3, compute_dtype=compute_dtype,
                    out_dtype=out_dtype, tile_b=tile_b)(x)


# ----------------------------- init / references ---------------------------

def orthogonal(key, rows, cols):
    """Deterministic orthogonal init (like torch.nn.init.orthogonal_)."""
    flat_rows, flat_cols = (rows, cols) if rows >= cols else (cols, rows)
    a = jax.random.normal(key, (flat_rows, flat_cols), dtype=jnp.float32)
    q, r = jnp.linalg.qr(a)
    d = jnp.sign(jnp.diagonal(r))
    d = jnp.where(d == 0, 1.0, d)
    q = q * d[None, :]
    if rows < cols:
        q = q.T
    return q[:rows, :cols]


def init_params(key, input_dim, hidden_dim, output_dim):
    k1, k2, k3 = jax.random.split(key, 3)
    # PyTorch stores Linear weight as [out, in]; orthogonalize there, then
    # transpose so the kernel computes x @ W + b directly.
    w1 = orthogonal(k1, hidden_dim, input_dim).T    # [in, hidden]
    w2 = orthogonal(k2, hidden_dim, hidden_dim).T   # [hidden, hidden]
    w3 = orthogonal(k3, output_dim, hidden_dim).T   # [hidden, out]
    b1 = jnp.zeros((1, hidden_dim), dtype=jnp.float32)
    b2 = jnp.zeros((1, hidden_dim), dtype=jnp.float32)
    return w1, b1, w2, b2, w3


def mlp_reference(x, w1, b1, w2, b2, w3):
    h = jnp.tanh(x @ w1 + b1)
    h = jnp.tanh(h @ w2 + b2)
    return h @ w3


def mlp_reference_bf16_ops(x, w1, b1, w2, b2, w3):
    """Emulates the kernel's bf16-operand / f32-accumulate numerics."""
    c = lambda a: a.astype(jnp.bfloat16).astype(jnp.float32)
    h = jnp.tanh(c(x) @ c(w1) + b1)
    h = jnp.tanh(c(h) @ c(w2) + b2)
    return c(h) @ c(w3)


if __name__ == "__main__":
    key = jax.random.PRNGKey(0)
    kx, kp = jax.random.split(key)

    batch, input_dim, hidden_dim, output_dim = 8, 4, 32, 4
    x = jax.random.normal(kx, (batch, input_dim), dtype=jnp.float32)
    w1, b1, w2, b2, w3 = init_params(kp, input_dim, hidden_dim, output_dim)

    ref_f32 = mlp_reference(x, w1, b1, w2, b2, w3)

    # 1) exact f32-operand path
    out_f32 = jax.block_until_ready(
        mlp_forward(x, w1, b1, w2, b2, w3, compute_dtype=jnp.float32))
    assert out_f32.shape == (batch, output_dim)
    assert jnp.allclose(out_f32, ref_f32, atol=1e-5, rtol=1e-5)

    # 2) default bf16-operand path, weight pad/cast hoisted via make_mlp
    fwd = make_mlp(w1, b1, w2, b2, w3)           # pads/casts weights once
    out_bf16 = jax.block_until_ready(fwd(x))
    assert out_bf16.shape == (batch, output_dim)
    ref_bf16 = mlp_reference_bf16_ops(x, w1, b1, w2, b2, w3)
    assert jnp.allclose(out_bf16, ref_bf16, atol=2e-2, rtol=2e-2)
    assert jnp.allclose(out_bf16, ref_f32, atol=1e-1, rtol=1e-1)

    print("KERNEL_OK")
</pallas_src>

<mosaic_0001>
module attributes {stable_mosaic.version = 11 : i64} {
  func.func @kernel(%arg0: i32, %arg1: memref<8x128xf32, #tpu.memory_space<vmem>>, %arg2: memref<128x128xf32, #tpu.memory_space<vmem>>, %arg3: memref<1x128xf32, #tpu.memory_space<vmem>>, %arg4: memref<128x128xf32, #tpu.memory_space<vmem>>, %arg5: memref<1x128xf32, #tpu.memory_space<vmem>>, %arg6: memref<128x128xf32, #tpu.memory_space<vmem>>, %arg7: memref<8x128xf32, #tpu.memory_space<vmem>>) attributes {dimension_semantics = [#tpu.dimension_semantics<parallel>], iteration_bounds = array<i64: 1>, scalar_prefetch = 0 : i64, scratch_operands = 0 : i64, tpu.core_type = #tpu.core_type<tc>, window_params = [{transform_indices = @transform_0, window_bounds = array<i64: 8, 128>}, {pipeline_mode = #tpu.pipeline_mode<synchronous>, transform_indices = @transform_1, window_bounds = array<i64: 128, 128>}, {pipeline_mode = #tpu.pipeline_mode<synchronous>, transform_indices = @transform_2, window_bounds = array<i64: 1, 128>}, {pipeline_mode = #tpu.pipeline_mode<synchronous>, transform_indices = @transform_3, window_bounds = array<i64: 128, 128>}, {pipeline_mode = #tpu.pipeline_mode<synchronous>, transform_indices = @transform_4, window_bounds = array<i64: 1, 128>}, {pipeline_mode = #tpu.pipeline_mode<synchronous>, transform_indices = @transform_5, window_bounds = array<i64: 128, 128>}, {transform_indices = @transform_6, window_bounds = array<i64: 8, 128>}]} {
    %c0 = arith.constant 0 : index
    %c0_0 = arith.constant 0 : index
    %0 = vector.load %arg1[%c0, %c0_0] : memref<8x128xf32, #tpu.memory_space<vmem>>, vector<8x128xf32>
    %c0_1 = arith.constant 0 : index
    %c0_2 = arith.constant 0 : index
    %1 = vector.load %arg2[%c0_1, %c0_2] : memref<128x128xf32, #tpu.memory_space<vmem>>, vector<128x128xf32>
    %cst = arith.constant dense<0.000000e+00> : vector<8x128xf32>
    %2 = tpu.matmul %0, %1, %cst {dimension_numbers = #tpu.dot_dimension_numbers<[1], [0], [0], [1], [0, 0, 1, 1], [], []>} : vector<8x128xf32>, vector<128x128xf32>, vector<8x128xf32> -> vector<8x128xf32>
    %c0_3 = arith.constant 0 : index
    %c0_4 = arith.constant 0 : index
    %3 = vector.load %arg3[%c0_3, %c0_4] : memref<1x128xf32, #tpu.memory_space<vmem>>, vector<1x128xf32>
    %4 = vector.broadcast %3 : vector<1x128xf32> to vector<8x128xf32>
    %5 = arith.addf %2, %4 : vector<8x128xf32>
    %6 = math.tanh %5 : vector<8x128xf32>
    %c0_5 = arith.constant 0 : index
    %c0_6 = arith.constant 0 : index
    %7 = vector.load %arg4[%c0_5, %c0_6] : memref<128x128xf32, #tpu.memory_space<vmem>>, vector<128x128xf32>
    %cst_7 = arith.constant dense<0.000000e+00> : vector<8x128xf32>
    %8 = tpu.matmul %6, %7, %cst_7 {dimension_numbers = #tpu.dot_dimension_numbers<[1], [0], [0], [1], [0, 0, 1, 1], [], []>} : vector<8x128xf32>, vector<128x128xf32>, vector<8x128xf32> -> vector<8x128xf32>
    %c0_8 = arith.constant 0 : index
    %c0_9 = arith.constant 0 : index
    %9 = vector.load %arg5[%c0_8, %c0_9] : memref<1x128xf32, #tpu.memory_space<vmem>>, vector<1x128xf32>
    %10 = vector.broadcast %9 : vector<1x128xf32> to vector<8x128xf32>
    %11 = arith.addf %8, %10 : vector<8x128xf32>
    %12 = math.tanh %11 : vector<8x128xf32>
    %c0_10 = arith.constant 0 : index
    %c0_11 = arith.constant 0 : index
    %13 = vector.load %arg6[%c0_10, %c0_11] : memref<128x128xf32, #tpu.memory_space<vmem>>, vector<128x128xf32>
    %cst_12 = arith.constant dense<0.000000e+00> : vector<8x128xf32>
    %14 = tpu.matmul %12, %13, %cst_12 {dimension_numbers = #tpu.dot_dimension_numbers<[1], [0], [0], [1], [0, 0, 1, 1], [], []>} : vector<8x128xf32>, vector<128x128xf32>, vector<8x128xf32> -> vector<8x128xf32>
    %c0_13 = arith.constant 0 : index
    %c0_14 = arith.constant 0 : index
    %15 = vector.load %arg7[%c0_13, %c0_14] : memref<8x128xf32, #tpu.memory_space<vmem>>, vector<8x128xf32>
    tpu.vector_store %arg7[%c0_13, %c0_14], %14 {strides = array<i32>} : memref<8x128xf32, #tpu.memory_space<vmem>>, vector<8x128xf32>,
    return
  }
  func.func @transform_0(%arg0: i32) -> (i32, i32) {
    %c0_i32 = arith.constant 0 : i32
    %c0_i32_0 = arith.constant 0 : i32
    return %arg0, %c0_i32 : i32, i32
  }
  func.func @transform_1(%arg0: i32) -> (i32, i32) {
    %c0_i32 = arith.constant 0 : i32
    %c0_i32_0 = arith.constant 0 : i32
    %c0_i32_1 = arith.constant 0 : i32
    return %c0_i32, %c0_i32_0 : i32, i32
  }
  func.func @transform_2(%arg0: i32) -> (i32, i32) {
    %c0_i32 = arith.constant 0 : i32
    %c0_i32_0 = arith.constant 0 : i32
    %c0_i32_1 = arith.constant 0 : i32
    return %c0_i32, %c0_i32_0 : i32, i32
  }
  func.func @transform_3(%arg0: i32) -> (i32, i32) {
    %c0_i32 = arith.constant 0 : i32
    %c0_i32_0 = arith.constant 0 : i32
    %c0_i32_1 = arith.constant 0 : i32
    return %c0_i32, %c0_i32_0 : i32, i32
  }
  func.func @transform_4(%arg0: i32) -> (i32, i32) {
    %c0_i32 = arith.constant 0 : i32
    %c0_i32_0 = arith.constant 0 : i32
    %c0_i32_1 = arith.constant 0 : i32
    return %c0_i32, %c0_i32_0 : i32, i32
  }
  func.func @transform_5(%arg0: i32) -> (i32, i32) {
    %c0_i32 = arith.constant 0 : i32
    %c0_i32_0 = arith.constant 0 : i32
    %c0_i32_1 = arith.constant 0 : i32
    return %c0_i32, %c0_i32_0 : i32, i32
  }
  func.func @transform_6(%arg0: i32) -> (i32, i32) {
    %c0_i32 = arith.constant 0 : i32
    %c0_i32_0 = arith.constant 0 : i32
    return %arg0, %c0_i32 : i32, i32
  }
}

module attributes {stable_mosaic.version = 11 : i64} {
  func.func @kernel(%arg0: i32, %arg1: memref<8x128xf32, #tpu.memory_space<vmem>>, %arg2: memref<128x128xf32, #tpu.memory_space<vmem>>, %arg3: memref<1x128xf32, #tpu.memory_space<vmem>>, %arg4: memref<128x128xf32, #tpu.memory_space<vmem>>, %arg5: memref<1x128xf32, #tpu.memory_space<vmem>>, %arg6: memref<128x128xf32, #tpu.memory_space<vmem>>, %arg7: memref<8x128xf32, #tpu.memory_space<vmem>>) attributes {dimension_semantics = [#tpu.dimension_semantics<parallel>], iteration_bounds = array<i64: 1>, scalar_prefetch = 0 : i64, scratch_operands = 0 : i64, tpu.core_type = #tpu.core_type<tc>, window_params = [{transform_indices = @transform_0, window_bounds = array<i64: 8, 128>}, {pipeline_mode = #tpu.pipeline_mode<synchronous>, transform_indices = @transform_1, window_bounds = array<i64: 128, 128>}, {pipeline_mode = #tpu.pipeline_mode<synchronous>, transform_indices = @transform_2, window_bounds = array<i64: 1, 128>}, {pipeline_mode = #tpu.pipeline_mode<synchronous>, transform_indices = @transform_3, window_bounds = array<i64: 128, 128>}, {pipeline_mode = #tpu.pipeline_mode<synchronous>, transform_indices = @transform_4, window_bounds = array<i64: 1, 128>}, {pipeline_mode = #tpu.pipeline_mode<synchronous>, transform_indices = @transform_5, window_bounds = array<i64: 128, 128>}, {transform_indices = @transform_6, window_bounds = array<i64: 8, 128>}]} {
    %c0 = arith.constant 0 : index
    %c0_0 = arith.constant 0 : index
    %0 = vector.load %arg1[%c0, %c0_0] : memref<8x128xf32, #tpu.memory_space<vmem>>, vector<8x128xf32>
    %c0_1 = arith.constant 0 : index
    %c0_2 = arith.constant 0 : index
    %1 = vector.load %arg2[%c0_1, %c0_2] : memref<128x128xf32, #tpu.memory_space<vmem>>, vector<128x128xf32>
    %cst = arith.constant dense<0.000000e+00> : vector<8x128xf32>
    %2 = tpu.matmul %0, %1, %cst {dimension_numbers = #tpu.dot_dimension_numbers<[1], [0], [0], [1], [0, 0, 1, 1], [], []>} : vector<8x128xf32>, vector<128x128xf32>, vector<8x128xf32> -> vector<8x128xf32>
    %c0_3 = arith.constant 0 : index
    %c0_4 = arith.constant 0 : index
    %3 = vector.load %arg3[%c0_3, %c0_4] : memref<1x128xf32, #tpu.memory_space<vmem>>, vector<1x128xf32>
    %4 = vector.broadcast %3 : vector<1x128xf32> to vector<8x128xf32>
    %5 = arith.addf %2, %4 : vector<8x128xf32>
    %6 = math.tanh %5 : vector<8x128xf32>
    %c0_5 = arith.constant 0 : index
    %c0_6 = arith.constant 0 : index
    %7 = vector.load %arg4[%c0_5, %c0_6] : memref<128x128xf32, #tpu.memory_space<vmem>>, vector<128x128xf32>
    %cst_7 = arith.constant dense<0.000000e+00> : vector<8x128xf32>
    %8 = tpu.matmul %6, %7, %cst_7 {dimension_numbers = #tpu.dot_dimension_numbers<[1], [0], [0], [1], [0, 0, 1, 1], [], []>} : vector<8x128xf32>, vector<128x128xf32>, vector<8x128xf32> -> vector<8x128xf32>
    %c0_8 = arith.constant 0 : index
    %c0_9 = arith.constant 0 : index
    %9 = vector.load %arg5[%c0_8, %c0_9] : memref<1x128xf32, #tpu.memory_space<vmem>>, vector<1x128xf32>
    %10 = vector.broadcast %9 : vector<1x128xf32> to vector<8x128xf32>
    %11 = arith.addf %8, %10 : vector<8x128xf32>
    %12 = math.tanh %11 : vector<8x128xf32>
    %c0_10 = arith.constant 0 : index
    %c0_11 = arith.constant 0 : index
    %13 = vector.load %arg6[%c0_10, %c0_11] : memref<128x128xf32, #tpu.memory_space<vmem>>, vector<128x128xf32>
    %cst_12 = arith.constant dense<0.000000e+00> : vector<8x128xf32>
    %14 = tpu.matmul %12, %13, %cst_12 {dimension_numbers = #tpu.dot_dimension_numbers<[1], [0], [0], [1], [0, 0, 1, 1], [], []>} : vector<8x128xf32>, vector<128x128xf32>, vector<8x128xf32> -> vector<8x128xf32>
    %c0_13 = arith.constant 0 : index
    %c0_14 = arith.constant 0 : index
    %15 = vector.load %arg7[%c0_13, %c0_14] : memref<8x128xf32, #tpu.memory_space<vmem>>, vector<8x128xf32>
    tpu.vector_store %arg7[%c0_13, %c0_14], %14 {strides = array<i32>} : memref<8x128xf32, #tpu.memory_space<vmem>>, vector<8x128xf32>,
    return
  }
  func.func @transform_0(%arg0: i32) -> (i32, i32) {
    %c0_i32 = arith.constant 0 : i32
    %c0_i32_0 = arith.constant 0 : i32
    return %arg0, %c0_i32 : i32, i32
  }
  func.func @transform_1(%arg0: i32) -> (i32, i32) {
    %c0_i32 = arith.constant 0 : i32
    %c0_i32_0 = arith.constant 0 : i32
    %c0_i32_1 = arith.constant 0 : i32
    return %c0_i32, %c0_i32_0 : i32, i32
  }
  func.func @transform_2(%arg0: i32) -> (i32, i32) {
    %c0_i32 = arith.constant 0 : i32
    %c0_i32_0 = arith.constant 0 : i32
    %c0_i32_1 = arith.constant 0 : i32
    return %c0_i32, %c0_i32_0 : i32, i32
  }
  func.func @transform_3(%arg0: i32) -> (i32, i32) {
    %c0_i32 = arith.constant 0 : i32
    %c0_i32_0 = arith.constant 0 : i32
    %c0_i32_1 = arith.constant 0 : i32
    return %c0_i32, %c0_i32_0 : i32, i32
  }
  func.func @transform_4(%arg0: i32) -> (i32, i32) {
    %c0_i32 = arith.constant 0 : i32
    %c0_i32_0 = arith.constant 0 : i32
    %c0_i32_1 = arith.constant 0 : i32
    return %c0_i32, %c0_i32_0 : i32, i32
  }
  func.func @transform_5(%arg0: i32) -> (i32, i32) {
    %c0_i32 = arith.constant 0 : i32
    %c0_i32_0 = arith.constant 0 : i32
    %c0_i32_1 = arith.constant 0 : i32
    return %c0_i32, %c0_i32_0 : i32, i32
  }
  func.func @transform_6(%arg0: i32) -> (i32, i32) {
    %c0_i32 = arith.constant 0 : i32
    %c0_i32_0 = arith.constant 0 : i32
    return %arg0, %c0_i32 : i32, i32
  }
}

</mosaic_0001>

<bundles_post_ra>
// kernel: tpu_custom_call.1
= control target key start
LH: loop header
LB: loop body
LE: loop exit
PB: predicated region body
PF: predicated region fallthrough
CT: control target
= control target key end

     0   :  { %11 = vsyncpa [#allocation3], 0  ;;  %s882_s0 = inlined_call_operand.hbm [shape: f32[8,128], index: 0, kind: input, shape index: {}]   ;;  %s883_s1 = inlined_call_operand.hbm [shape: f32[128,128], index: 1, kind: input, shape index: {}]   ;;  %s884_s2 = inlined_call_operand.vmem [shape: f32[1,128], index: 2, kind: input, shape index: {}]   ;;  %s885_s3 = inlined_call_operand.hbm [shape: f32[128,128], index: 3, kind: input, shape index: {}]   ;;  %s886_s4 = inlined_call_operand.vmem [shape: f32[1,128], index: 4, kind: input, shape index: {}]   ;;  %s887_s5 = inlined_call_operand.hbm [shape: f32[128,128], index: 5, kind: input, shape index: {}]   ;;  %s888_s6 = inlined_call_operand.hbm [shape: f32[8,128], index: 6, kind: output, shape index: {}]  }
   0x1   :  { %12 = vsyncpa [#allocation6], 0 }
   0x2   :  { %13 = vsyncpa [#allocation9], 0 }
   0x3   :  { %14 = vsyncpa [#allocation4], 0  ;;  %s732_s21 = smov [#allocation5]   ;;  %s614_s25 = scalar_lea.hbm %s883_s1, 2048 }
   0x4   :  { %s30_s22 = sshll.u32 %s732_s21, 4  ;;  %p615_p0 = scmp.ne.s32.totalorder %s883_s1, %s614_s25  ;;  %s31_s22 = int_to_ptr.vmem [resolvable:$true] %s30_s22 }
   0x5   :  { %p618_p1 = scmp.lt.u32.totalorder %s614_s25, %s883_s1 }
   0x7   :  { %p620_p2 = pnand %p618_p1, %p615_p0 }
   0x9   :  { %623 = shalt.err (!%p620_p2)
}
   0xa   :  { %s624_s30 = scalar_lea.vmem %s31_s22, 2048  ;;  %p629_p4 = scmp.lt.s32.totalorder %s31_s22, %s31_s22 }
   0xb   :  { %p625_p3 = scmp.ne.s32.totalorder %s31_s22, %s624_s30  ;;  %p630_p5 = scmp.lt.s32.totalorder %s624_s30, %s624_s30 }
   0xd   :  { %p631_p6 = por %p630_p5, %p629_p4 }
   0xf   :  { %p632_p7 = pnand %p631_p6, %p625_p3 }
  0x11   :  { %635 = shalt.err (!%p632_p7)
}
  0x12   :  { %s733_s7 = smov 128   ;;  %s734_s8 = smov 8  }
  0x13   :  { %36 = dma.hbm_to_vmem [thread:$0]  %s883_s1, 2048, %s31_s22, [#allocation6], %s733_s7, %s733_s7, %s734_s8  }
  0x14   :  { %s735_s11 = smov [#allocation2]   ;;  %s736_s13 = smov [#allocation7]  }
  0x15   :  { %s21_s12 = sshll.u32 %s735_s11, 4  ;;  %s44_s14 = sshll.u32 %s736_s13, 4  ;;  %s22_s12 = int_to_ptr.vmem [resolvable:$true] %s21_s12  ;;  %s45_s14 = int_to_ptr.vmem [resolvable:$true] %s44_s14 }
  0x16   :  { %s636_s17 = scalar_lea.hbm %s882_s0, 128 }
  0x17   :  { %p637_p8 = scmp.ne.s32.totalorder %s882_s0, %s636_s17  ;;  %p640_p9 = scmp.lt.u32.totalorder %s636_s17, %s882_s0 }
  0x19   :  { %p642_p10 = pnand %p640_p9, %p637_p8 }
  0x1b   :  { %645 = shalt.err (!%p642_p10)
}
  0x1c   :  { %s646_s1 = scalar_lea.vmem %s22_s12, 128  ;;  %p651_p12 = scmp.lt.s32.totalorder %s22_s12, %s22_s12 }
  0x1d   :  { %p647_p11 = scmp.ne.s32.totalorder %s22_s12, %s646_s1  ;;  %p652_p13 = scmp.lt.s32.totalorder %s646_s1, %s646_s1 }
  0x1f   :  { %p653_p0 = por %p652_p13, %p651_p12 }
  0x21   :  { %p654_p1 = pnand %p653_p0, %p647_p11 }
  0x23   :  { %657 = shalt.err (!%p654_p1)
}
  0x24   :  { %24 = dma.hbm_to_vmem [thread:$0]  %s882_s0, 128, %s22_s12, [#allocation3]  }
  0x25   :  { %s658_s26 = scalar_lea.hbm %s885_s3, 2048 }
  0x26   :  { %p659_p2 = scmp.ne.s32.totalorder %s885_s3, %s658_s26  ;;  %p662_p3 = scmp.lt.u32.totalorder %s658_s26, %s885_s3 }
  0x28   :  { %p664_p4 = pnand %p662_p3, %p659_p2 }
  0x2a   :  { %667 = shalt.err (!%p664_p4)
}
  0x2b   :  { %s668_s9 = scalar_lea.vmem %s45_s14, 2048  ;;  %p673_p6 = scmp.lt.s32.totalorder %s45_s14, %s45_s14 }
  0x2c   :  { %p669_p5 = scmp.ne.s32.totalorder %s45_s14, %s668_s9  ;;  %p674_p7 = scmp.lt.s32.totalorder %s668_s9, %s668_s9 }
  0x2e   :  { %p675_p8 = por %p674_p7, %p673_p6 }
  0x30   :  { %p676_p9 = pnand %p675_p8, %p669_p5 }
  0x32   :  { %679 = shalt.err (!%p676_p9)
}
  0x33   :  { %50 = dma.hbm_to_vmem [thread:$0]  %s885_s3, 2048, %s45_s14, [#allocation6], %s733_s7, %s733_s7, %s734_s8  }
  0x34   :  { %s737_s11 = smov [#allocation8]   ;;  %s680_s16 = scalar_lea.hbm %s887_s5, 2048 }
  0x35   :  { %s58_s12 = sshll.u32 %s737_s11, 4  ;;  %p681_p10 = scmp.ne.s32.totalorder %s887_s5, %s680_s16  ;;  %s59_s12 = int_to_ptr.vmem [resolvable:$true] %s58_s12 }
  0x36   :  { %p684_p11 = scmp.lt.u32.totalorder %s680_s16, %s887_s5 }
  0x38   :  { %p686_p12 = pnand %p684_p11, %p681_p10 }
  0x3a   :  { %689 = shalt.err (!%p686_p12)
}
  0x3b   :  { %s690_s21 = scalar_lea.vmem %s59_s12, 2048  ;;  %p695_p0 = scmp.lt.s32.totalorder %s59_s12, %s59_s12 }
  0x3c   :  { %p691_p13 = scmp.ne.s32.totalorder %s59_s12, %s690_s21  ;;  %p696_p1 = scmp.lt.s32.totalorder %s690_s21, %s690_s21 }
  0x3e   :  { %p697_p2 = por %p696_p1, %p695_p0 }
  0x40   :  { %p698_p3 = pnand %p697_p2, %p691_p13 }
  0x42   :  { %701 = shalt.err (!%p698_p3)
}
  0x43   :  { %64 = dma.hbm_to_vmem [thread:$0]  %s887_s5, 2048, %s59_s12, [#allocation9], %s733_s7, %s733_s7, %s734_s8  }
  0x44   :  { %724 = dma.done.wait [#allocation3], 128  }
  0x45   :  { %725 = vsyncadd [#allocation3], 4294967168 }
  0x46   :  { %726 = dma.done.wait [#allocation6], 4096  }
  0x47   :  { %727 = vsyncadd [#allocation6], 4294963200 }
  0x48   :  { %728 = dma.done.wait [#allocation9], 2048  }
  0x49   :  { %729 = vsyncadd [#allocation9], 4294965248  ;;  %v738_v0 = vmov 0.0|0.0   ;;  %vm739_vm0 = vmmov 0   ;;  %v740_v1 = vmov 0.0   ;;  %v78_v2 = vld [vmem:[#allocation5] sm:$0xff] }
  0x4a   :  { %528 = vmatprep.subr.bf16.mxu0 %v738_v0  ;;  %455 = vmatprep.mubr.msk.f32.mxu0 %vm739_vm0, %v740_v1  ;;  %v79_v3 = vld [vmem:[#allocation5 + $0x8] sm:$0xff]  ;;  %v80_v4 = vld [vmem:[#allocation5 + $0x10] sm:$0xff]  ;;  %v81_v6 = vld [vmem:[#allocation5 + $0x18] sm:$0xff]  ;;  %s741_s1 = smov [#allocation10]  }
  0x4b   :  { %552 = vmatprep.subr.bf16.mxu1 %v738_v0  ;;  %490 = vmatprep.mubr.msk.f32.mxu1 %vm739_vm0, %v740_v1  ;;  %v529_v5 = vpack.c.bf16 %v79_v3, %v78_v2  ;;  %v532_v7 = vpack.c.bf16 %v81_v6, %v80_v4  ;;  %v82_v8 = vld [vmem:[#allocation5 + $0x20] sm:$0xff]  ;;  %v83_v9 = vld [vmem:[#allocation5 + $0x28] sm:$0xff]  ;;  %v174_v12 = vld [vmem:[#allocation7 + $0x10] sm:$0xff]  ;;  %s359_s22 = sshll.u32 %s741_s1, 4  ;;  %s360_s22 = int_to_ptr.vmem [resolvable:$true] %s359_s22 }
  0x4c   :  { %v172_v10 = vld [vmem:[#allocation7] sm:$0xff]  ;;  %v173_v11 = vld [vmem:[#allocation7 + $0x8] sm:$0xff]  ;;  %v175_v13 = vld [vmem:[#allocation7 + $0x18] sm:$0xff]  ;;  %v535_v14 = vpack.c.bf16 %v83_v9, %v82_v8  ;;  %s702_s23 = scalar_lea.vmem %s360_s22, 128  ;;  %p707_p5 = scmp.lt.s32.totalorder %s360_s22, %s360_s22 }
  0x4d   :  { %530 = vmatpush3.bf16.msra.mxu0 %v529_v5  ;;  %v553_v15 = vpack.c.bf16 %v173_v11, %v172_v10  ;;  %v84_v16 = vld [vmem:[#allocation5 + $0x30] sm:$0xff]  ;;  %v85_v17 = vld [vmem:[#allocation5 + $0x38] sm:$0xff]  ;;  %v556_v18 = vpack.c.bf16 %v175_v13, %v174_v12  ;;  %v176_v19 = vld [vmem:[#allocation7 + $0x20] sm:$0xff]  ;;  %p703_p4 = scmp.ne.s32.totalorder %s360_s22, %s702_s23  ;;  %p708_p6 = scmp.lt.s32.totalorder %s702_s23, %s702_s23 }
  0x4e   :  { %531 = vmatprep.subr.bf16.mxu0 %v738_v0  ;;  %v177_v20 = vld [vmem:[#allocation7 + $0x28] sm:$0xff]  ;;  %v538_v21 = vpack.c.bf16 %v85_v17, %v84_v16  ;;  %v86_v22 = vld [vmem:[#allocation5 + $0x40] sm:$0xff]  ;;  %v178_v25 = vld [vmem:[#allocation7 + $0x30] sm:$0xff] }
  0x4f   :  { %554 = vmatpush3.bf16.msra.mxu1 %v553_v15  ;;  %v87_v23 = vld [vmem:[#allocation5 + $0x48] sm:$0xff]  ;;  %v559_v24 = vpack.c.bf16 %v177_v20, %v176_v19  ;;  %v179_v26 = vld [vmem:[#allocation7 + $0x38] sm:$0xff]  ;;  %v88_v28 = vld [vmem:[#allocation5 + $0x50] sm:$0xff]  ;;  %p709_p7 = por %p708_p6, %p707_p5 }
  0x50   :  { %555 = vmatprep.subr.bf16.mxu1 %v738_v0  ;;  %v541_v27 = vpack.c.bf16 %v87_v23, %v86_v22  ;;  %v89_v29 = vld [vmem:[#allocation5 + $0x58] sm:$0xff]  ;;  %v562_v30 = vpack.c.bf16 %v179_v26, %v178_v25  ;;  %v180_v31 = vld [vmem:[#allocation7 + $0x40] sm:$0xff]  ;;  %v181_v32 = vld [vmem:[#allocation7 + $0x48] sm:$0xff] }
  0x51   :  { %533 = vmatpush3.bf16.msra.mxu0 %v532_v7  ;;  %v544_v33 = vpack.c.bf16 %v89_v29, %v88_v28  ;;  %v90_v34 = vld [vmem:[#allocation5 + $0x60] sm:$0xff]  ;;  %v91_v35 = vld [vmem:[#allocation5 + $0x68] sm:$0xff]  ;;  %v565_v36 = vpack.c.bf16 %v181_v32, %v180_v31  ;;  %v92_v38 = vld [vmem:[#allocation5 + $0x70] sm:$0xff]  ;;  %p710_p8 = pnand %p709_p7, %p703_p4 }
  0x52   :  { %534 = vmatprep.subr.bf16.mxu0 %v738_v0  ;;  %v547_v37 = vpack.c.bf16 %v91_v35, %v90_v34  ;;  %v93_v39 = vld [vmem:[#allocation5 + $0x78] sm:$0xff]  ;;  %v182_v42 = vld [vmem:[#allocation7 + $0x50] sm:$0xff]  ;;  %v184_v45 = vld [vmem:[#allocation7 + $0x60] sm:$0xff] }
  0x53   :  { %557 = vmatpush3.bf16.msra.mxu1 %v556_v18  ;;  %v550_v40 = vpack.c.bf16 %v93_v39, %v92_v38  ;;  %v77_v41 = vld [vmem:[#allocation2] sm:$0xff]  ;;  %v185_v46 = vld [vmem:[#allocation7 + $0x68] sm:$0xff]  ;;  %v186_v48 = vld [vmem:[#allocation7 + $0x70] sm:$0xff] }
  0x54   :  { %558 = vmatprep.subr.bf16.mxu1 %v738_v0  ;;  %v183_v43 = vld [vmem:[#allocation7 + $0x58] sm:$0xff]  ;;  %v571_v47 = vpack.c.bf16 %v185_v46, %v184_v45  ;;  %v266_v51 = vld [vmem:[#allocation8] sm:$0xff]  ;;  %v267_v52 = vld [vmem:[#allocation8 + $0x8] sm:$0xff] }
  0x55   :  { %536 = vmatpush3.bf16.msra.mxu0 %v535_v14  ;;  %v568_v44 = vpack.c.bf16 %v183_v43, %v182_v42  ;;  %v187_v49 = vld [vmem:[#allocation7 + $0x78] sm:$0xff]  ;;  %v268_v53 = vld [vmem:[#allocation8 + $0x10] sm:$0xff]  ;;  %v577_v54 = vpack.c.bf16 %v267_v52, %v266_v51  ;;  %v270_v57 = vld [vmem:[#allocation8 + $0x20] sm:$0xff] }
  0x56   :  { %537 = vmatprep.subr.bf16.mxu0 %v738_v0  ;;  %v574_v50 = vpack.c.bf16 %v187_v49, %v186_v48  ;;  %v269_v55 = vld [vmem:[#allocation8 + $0x18] sm:$0xff]  ;;  %v271_v58 = vld [vmem:[#allocation8 + $0x28] sm:$0xff]  ;;  %v272_v60 = vld [vmem:[#allocation8 + $0x30] sm:$0xff] }
  0x57   :  { %560 = vmatpush3.bf16.msra.mxu1 %v559_v24  ;;  %v580_v56 = vpack.c.bf16 %v269_v55, %v268_v53  ;;  %v583_v59 = vpack.c.bf16 %v271_v58, %v270_v57  ;;  %v273_v61 = vld [vmem:[#allocation8 + $0x38] sm:$0xff]  ;;  %v274_v63 = vld [vmem:[#allocation8 + $0x40] sm:$0xff]  ;;  %v276_v8 = vld [vmem:[#allocation8 + $0x50] sm:$0xff] }
  0x58   :  { %561 = vmatprep.subr.bf16.mxu1 %v738_v0  ;;  %v586_v62 = vpack.c.bf16 %v273_v61, %v272_v60  ;;  %v370_v3 = vld [vmem:[%s884_s2] ss:$0 sm:$0xff]  ;;  %v278_v11 = vld [vmem:[#allocation8 + $0x60] sm:$0xff]  ;;  %v279_v12 = vld [vmem:[#allocation8 + $0x68] sm:$0xff] }
  0x59   :  { %539 = vmatpush3.bf16.msra.mxu0 %v538_v21  ;;  %v277_v9 = vld [vmem:[#allocation8 + $0x58] sm:$0xff]  ;;  %v595_v13 = vpack.c.bf16 %v279_v12, %v278_v11  ;;  %v280_v14 = vld [vmem:[#allocation8 + $0x70] sm:$0xff] }
  0x5a   :  { %540 = vmatprep.subr.bf16.mxu0 %v738_v0  ;;  %v592_v10 = vpack.c.bf16 %v277_v9, %v276_v8  ;;  %v281_v15 = vld [vmem:[#allocation8 + $0x78] sm:$0xff] }
  0x5b   :  { %563 = vmatpush3.bf16.msra.mxu1 %v562_v30  ;;  %v598_v16 = vpack.c.bf16 %v281_v15, %v280_v14  ;;  %v371_v17 = vld [vmem:[%s886_s4] ss:$0 sm:$0xff] }
  0x5c   :  { %564 = vmatprep.subr.bf16.mxu1 %v738_v0 }
  0x5d   :  { %542 = vmatpush3.bf16.msra.mxu0 %v541_v27 }
  0x5e   :  { %543 = vmatprep.subr.bf16.mxu0 %v738_v0 }
  0x5f   :  { %566 = vmatpush3.bf16.msra.mxu1 %v565_v36 }
  0x60   :  { %567 = vmatprep.subr.bf16.mxu1 %v738_v0 }
  0x61   :  { %545 = vmatpush3.bf16.msra.mxu0 %v544_v33 }
  0x62   :  { %546 = vmatprep.subr.bf16.mxu0 %v738_v0 }
  0x63   :  { %569 = vmatpush3.bf16.msra.mxu1 %v568_v44 }
  0x64   :  { %570 = vmatprep.subr.bf16.mxu1 %v738_v0 }
  0x65   :  { %548 = vmatpush3.bf16.msra.mxu0 %v547_v37 }
  0x66   :  { %549 = vmatprep.subr.bf16.mxu0 %v738_v0 }
  0x67   :  { %572 = vmatpush3.bf16.msra.mxu1 %v571_v47 }
  0x68   :  { %573 = vmatprep.subr.bf16.mxu1 %v738_v0 }
  0x69   :  { %551 = vmatpush3.bf16.msra.mxu0 %v550_v40 }
  0x6a   :  { %576 = vmatprep.subr.bf16.mxu0 %v738_v0 }
  0x6b   :  { %575 = vmatpush3.bf16.msra.mxu1 %v574_v50 }
  0x6c   :  { %456 = vmatmul.mubr.f32.vlgmr.msra.gmra.mrb[0].mxu0 %v77_v41 }
  0x6d   :  { %525 = vmatprep.mubr.msk.f32.mxu0 %vm739_vm0, %v740_v1  ;;  %578 = vmatpush3.bf16.msra.mxu0 %v577_v54  ;;  %v275_v1 = vld [vmem:[#allocation8 + $0x48] sm:$0xff] }
  0x6e   :  { %579 = vmatprep.subr.bf16.mxu0 %v738_v0  ;;  %v589_v2 = vpack.c.bf16 %v275_v1, %v274_v63 }
  0x71   :  { %581 = vmatpush3.bf16.msra.mxu0 %v580_v56 }
  0x72   :  { %582 = vmatprep.subr.bf16.mxu0 %v738_v0 }
  0x75   :  { %584 = vmatpush3.bf16.msra.mxu0 %v583_v59 }
  0x76   :  { %585 = vmatprep.subr.bf16.mxu0 %v738_v0 }
  0x79   :  { %587 = vmatpush3.bf16.msra.mxu0 %v586_v62 }
  0x7a   :  { %588 = vmatprep.subr.bf16.mxu0 %v738_v0 }
  0x7d   :  { %590 = vmatpush3.bf16.msra.mxu0 %v589_v2 }
  0x7e   :  { %591 = vmatprep.subr.bf16.mxu0 %v738_v0 }
  0x81   :  { %593 = vmatpush3.bf16.msra.mxu0 %v592_v10 }
  0x82   :  { %594 = vmatprep.subr.bf16.mxu0 %v738_v0 }
  0x85   :  { %596 = vmatpush3.bf16.msra.mxu0 %v595_v13 }
  0x86   :  { %597 = vmatprep.subr.bf16.mxu0 %v738_v0 }
  0x89   :  { %599 = vmatpush3.bf16.msra.mxu0 %v598_v16 }
 0x13f   :  { %v167_v4 = vpop.f32.mrb[0].mxu0 }
 0x140   :  { %v168_v5 = vadd.f32 %v370_v3, %v167_v4  ;;  %v457_v6 = vpop.f32.mrb[1].mxu0 }
 0x142   :  { %610 = vtanh.f32 %v168_v5 }
 0x14c   :  { %v611_v7 = vpop.eup %610 }
 0x14d   :  { %491 = vmatmul.mubr.f32.vlgmr.msra.gmra.mrb[0].mxu1 %v611_v7 }
 0x220   :  { %v261_v18 = vpop.f32.mrb[0].mxu1 }
 0x221   :  { %v262_v19 = vadd.f32 %v371_v17, %v261_v18  ;;  %v492_v20 = vpop.f32.mrb[1].mxu1 }
 0x223   :  { %612 = vtanh.f32 %v262_v19 }
 0x22d   :  { %v613_v21 = vpop.eup %612 }
 0x22e   :  { %526 = vmatmul.mubr.f32.vlgmr.msra.gmra.mrb[2].mxu0 %v613_v21 }
 0x301   :  { %v348_v22 = vpop.f32.mrb[2].mxu0 }
 0x302   :  { %352 = vst [vmem:[#allocation10] sm:$0xff] %v348_v22  ;;  %v527_v23 = vpop.f32.mrb[3].mxu0 }
 0x303   :  { %713 = shalt.err (!%p710_p8)
}
 0x304   :  { %s714_s25 = scalar_lea.hbm %s888_s6, 128 }
 0x305   :  { %p715_p9 = scmp.ne.s32.totalorder %s888_s6, %s714_s25  ;;  %p718_p10 = scmp.lt.u32.totalorder %s714_s25, %s888_s6 }
 0x307   :  { %p720_p11 = pnand %p718_p10, %p715_p9 }
 0x309   :  { %723 = shalt.err (!%p720_p11)
}
 0x30a   :  { %362 = dma.vmem_to_hbm [thread:$0]  %s360_s22, 128, %s888_s6, [#allocation4]  }
 0x30b   :  { %730 = dma.done.wait [#allocation4], 128  }
 0x30c   :  { %731 = vsyncadd [#allocation4], 4294967168 }
 0x30d   :  { %366 = vsyncpa [#allocation3], 1 }
 0x30e   :  { %367 = vsyncpa [#allocation6], 1 }
 0x30f   :  { %368 = vsyncpa [#allocation9], 1 }
 0x310   :  { %369 = vsyncpa [#allocation4], 1 }

// kernel: tpu_custom_call.1
= control target key start
LH: loop header
LB: loop body
LE: loop exit
PB: predicated region body
PF: predicated region fallthrough
CT: control target
= control target key end

     0   :  { %11 = vsyncpa [#allocation3], 0  ;;  %s882_s0 = inlined_call_operand.hbm [shape: f32[8,128], index: 0, kind: input, shape index: {}]   ;;  %s883_s1 = inlined_call_operand.hbm [shape: f32[128,128], index: 1, kind: input, shape index: {}]   ;;  %s884_s2 = inlined_call_operand.vmem [shape: f32[1,128], index: 2, kind: input, shape index: {}]   ;;  %s885_s3 = inlined_call_operand.hbm [shape: f32[128,128], index: 3, kind: input, shape index: {}]   ;;  %s886_s4 = inlined_call_operand.vmem [shape: f32[1,128], index: 4, kind: input, shape index: {}]   ;;  %s887_s5 = inlined_call_operand.hbm [shape: f32[128,128], index: 5, kind: input, shape index: {}]   ;;  %s888_s6 = inlined_call_operand.hbm [shape: f32[8,128], index: 6, kind: output, shape index: {}]  }
   0x1   :  { %12 = vsyncpa [#allocation6], 0 }
   0x2   :  { %13 = vsyncpa [#allocation9], 0 }
   0x3   :  { %14 = vsyncpa [#allocation4], 0  ;;  %s732_s21 = smov [#allocation5]   ;;  %s614_s25 = scalar_lea.hbm %s883_s1, 2048 }
   0x4   :  { %s30_s22 = sshll.u32 %s732_s21, 4  ;;  %p615_p0 = scmp.ne.s32.totalorder %s883_s1, %s614_s25  ;;  %s31_s22 = int_to_ptr.vmem [resolvable:$true] %s30_s22 }
   0x5   :  { %p618_p1 = scmp.lt.u32.totalorder %s614_s25, %s883_s1 }
   0x7   :  { %p620_p2 = pnand %p618_p1, %p615_p0 }
   0x9   :  { %623 = shalt.err (!%p620_p2)
}
   0xa   :  { %s624_s30 = scalar_lea.vmem %s31_s22, 2048  ;;  %p629_p4 = scmp.lt.s32.totalorder %s31_s22, %s31_s22 }
   0xb   :  { %p625_p3 = scmp.ne.s32.totalorder %s31_s22, %s624_s30  ;;  %p630_p5 = scmp.lt.s32.totalorder %s624_s30, %s624_s30 }
   0xd   :  { %p631_p6 = por %p630_p5, %p629_p4 }
   0xf   :  { %p632_p7 = pnand %p631_p6, %p625_p3 }
  0x11   :  { %635 = shalt.err (!%p632_p7)
}
  0x12   :  { %s733_s7 = smov 128   ;;  %s734_s8 = smov 8  }
  0x13   :  { %36 = dma.hbm_to_vmem [thread:$0]  %s883_s1, 2048, %s31_s22, [#allocation6], %s733_s7, %s733_s7, %s734_s8  }
  0x14   :  { %s735_s11 = smov [#allocation2]   ;;  %s736_s13 = smov [#allocation7]  }
  0x15   :  { %s21_s12 = sshll.u32 %s735_s11, 4  ;;  %s44_s14 = sshll.u32 %s736_s13, 4  ;;  %s22_s12 = int_to_ptr.vmem [resolvable:$true] %s21_s12  ;;  %s45_s14 = int_to_ptr.vmem [resolvable:$true] %s44_s14 }
  0x16   :  { %s636_s17 = scalar_lea.hbm %s882_s0, 128 }
  0x17   :  { %p637_p8 = scmp.ne.s32.totalorder %s882_s0, %s636_s17  ;;  %p640_p9 = scmp.lt.u32.totalorder %s636_s17, %s882_s0 }
  0x19   :  { %p642_p10 = pnand %p640_p9, %p637_p8 }
  0x1b   :  { %645 = shalt.err (!%p642_p10)
}
  0x1c   :  { %s646_s1 = scalar_lea.vmem %s22_s12, 128  ;;  %p651_p12 = scmp.lt.s32.totalorder %s22_s12, %s22_s12 }
  0x1d   :  { %p647_p11 = scmp.ne.s32.totalorder %s22_s12, %s646_s1  ;;  %p652_p13 = scmp.lt.s32.totalorder %s646_s1, %s646_s1 }
  0x1f   :  { %p653_p0 = por %p652_p13, %p651_p12 }
  0x21   :  { %p654_p1 = pnand %p653_p0, %p647_p11 }
  0x23   :  { %657 = shalt.err (!%p654_p1)
}
  0x24   :  { %24 = dma.hbm_to_vmem [thread:$0]  %s882_s0, 128, %s22_s12, [#allocation3]  }
  0x25   :  { %s658_s26 = scalar_lea.hbm %s885_s3, 2048 }
  0x26   :  { %p659_p2 = scmp.ne.s32.totalorder %s885_s3, %s658_s26  ;;  %p662_p3 = scmp.lt.u32.totalorder %s658_s26, %s885_s3 }
  0x28   :  { %p664_p4 = pnand %p662_p3, %p659_p2 }
  0x2a   :  { %667 = shalt.err (!%p664_p4)
}
  0x2b   :  { %s668_s9 = scalar_lea.vmem %s45_s14, 2048  ;;  %p673_p6 = scmp.lt.s32.totalorder %s45_s14, %s45_s14 }
  0x2c   :  { %p669_p5 = scmp.ne.s32.totalorder %s45_s14, %s668_s9  ;;  %p674_p7 = scmp.lt.s32.totalorder %s668_s9, %s668_s9 }
  0x2e   :  { %p675_p8 = por %p674_p7, %p673_p6 }
  0x30   :  { %p676_p9 = pnand %p675_p8, %p669_p5 }
  0x32   :  { %679 = shalt.err (!%p676_p9)
}
  0x33   :  { %50 = dma.hbm_to_vmem [thread:$0]  %s885_s3, 2048, %s45_s14, [#allocation6], %s733_s7, %s733_s7, %s734_s8  }
  0x34   :  { %s737_s11 = smov [#allocation8]   ;;  %s680_s16 = scalar_lea.hbm %s887_s5, 2048 }
  0x35   :  { %s58_s12 = sshll.u32 %s737_s11, 4  ;;  %p681_p10 = scmp.ne.s32.totalorder %s887_s5, %s680_s16  ;;  %s59_s12 = int_to_ptr.vmem [resolvable:$true] %s58_s12 }
  0x36   :  { %p684_p11 = scmp.lt.u32.totalorder %s680_s16, %s887_s5 }
  0x38   :  { %p686_p12 = pnand %p684_p11, %p681_p10 }
  0x3a   :  { %689 = shalt.err (!%p686_p12)
}
  0x3b   :  { %s690_s21 = scalar_lea.vmem %s59_s12, 2048  ;;  %p695_p0 = scmp.lt.s32.totalorder %s59_s12, %s59_s12 }
  0x3c   :  { %p691_p13 = scmp.ne.s32.totalorder %s59_s12, %s690_s21  ;;  %p696_p1 = scmp.lt.s32.totalorder %s690_s21, %s690_s21 }
  0x3e   :  { %p697_p2 = por %p696_p1, %p695_p0 }
  0x40   :  { %p698_p3 = pnand %p697_p2, %p691_p13 }
  0x42   :  { %701 = shalt.err (!%p698_p3)
}
  0x43   :  { %64 = dma.hbm_to_vmem [thread:$0]  %s887_s5, 2048, %s59_s12, [#allocation9], %s733_s7, %s733_s7, %s734_s8  }
  0x44   :  { %724 = dma.done.wait [#allocation3], 128  }
  0x45   :  { %725 = vsyncadd [#allocation3], 4294967168 }
  0x46   :  { %726 = dma.done.wait [#allocation6], 4096  }
  0x47   :  { %727 = vsyncadd [#allocation6], 4294963200 }
  0x48   :  { %728 = dma.done.wait [#allocation9], 2048  }
  0x49   :  { %729 = vsyncadd [#allocation9], 4294965248  ;;  %v738_v0 = vmov 0.0|0.0   ;;  %vm739_vm0 = vmmov 0   ;;  %v740_v1 = vmov 0.0   ;;  %v78_v2 = vld [vmem:[#allocation5] sm:$0xff] }
  0x4a   :  { %528 = vmatprep.subr.bf16.mxu0 %v738_v0  ;;  %455 = vmatprep.mubr.msk.f32.mxu0 %vm739_vm0, %v740_v1  ;;  %v79_v3 = vld [vmem:[#allocation5 + $0x8] sm:$0xff]  ;;  %v80_v4 = vld [vmem:[#allocation5 + $0x10] sm:$0xff]  ;;  %v81_v6 = vld [vmem:[#allocation5 + $0x18] sm:$0xff]  ;;  %s741_s1 = smov [#allocation10]  }
  0x4b   :  { %552 = vmatprep.subr.bf16.mxu1 %v738_v0  ;;  %490 = vmatprep.mubr.msk.f32.mxu1 %vm739_vm0, %v740_v1  ;;  %v529_v5 = vpack.c.bf16 %v79_v3, %v78_v2  ;;  %v532_v7 = vpack.c.bf16 %v81_v6, %v80_v4  ;;  %v82_v8 = vld [vmem:[#allocation5 + $0x20] sm:$0xff]  ;;  %v83_v9 = vld [vmem:[#allocation5 + $0x28] sm:$0xff]  ;;  %v174_v12 = vld [vmem:[#allocation7 + $0x10] sm:$0xff]  ;;  %s359_s22 = sshll.u32 %s741_s1, 4  ;;  %s360_s22 = int_to_ptr.vmem [resolvable:$true] %s359_s22 }
  0x4c   :  { %v172_v10 = vld [vmem:[#allocation7] sm:$0xff]  ;;  %v173_v11 = vld [vmem:[#allocation7 + $0x8] sm:$0xff]  ;;  %v175_v13 = vld [vmem:[#allocation7 + $0x18] sm:$0xff]  ;;  %v535_v14 = vpack.c.bf16 %v83_v9, %v82_v8  ;;  %s702_s23 = scalar_lea.vmem %s360_s22, 128  ;;  %p707_p5 = scmp.lt.s32.totalorder %s360_s22, %s360_s22 }
  0x4d   :  { %530 = vmatpush3.bf16.msra.mxu0 %v529_v5  ;;  %v553_v15 = vpack.c.bf16 %v173_v11, %v172_v10  ;;  %v84_v16 = vld [vmem:[#allocation5 + $0x30] sm:$0xff]  ;;  %v85_v17 = vld [vmem:[#allocation5 + $0x38] sm:$0xff]  ;;  %v556_v18 = vpack.c.bf16 %v175_v13, %v174_v12  ;;  %v176_v19 = vld [vmem:[#allocation7 + $0x20] sm:$0xff]  ;;  %p703_p4 = scmp.ne.s32.totalorder %s360_s22, %s702_s23  ;;  %p708_p6 = scmp.lt.s32.totalorder %s702_s23, %s702_s23 }
  0x4e   :  { %531 = vmatprep.subr.bf16.mxu0 %v738_v0  ;;  %v177_v20 = vld [vmem:[#allocation7 + $0x28] sm:$0xff]  ;;  %v538_v21 = vpack.c.bf16 %v85_v17, %v84_v16  ;;  %v86_v22 = vld [vmem:[#allocation5 + $0x40] sm:$0xff]  ;;  %v178_v25 = vld [vmem:[#allocation7 + $0x30] sm:$0xff] }
  0x4f   :  { %554 = vmatpush3.bf16.msra.mxu1 %v553_v15  ;;  %v87_v23 = vld [vmem:[#allocation5 + $0x48] sm:$0xff]  ;;  %v559_v24 = vpack.c.bf16 %v177_v20, %v176_v19  ;;  %v179_v26 = vld [vmem:[#allocation7 + $0x38] sm:$0xff]  ;;  %v88_v28 = vld [vmem:[#allocation5 + $0x50] sm:$0xff]  ;;  %p709_p7 = por %p708_p6, %p707_p5 }
  0x50   :  { %555 = vmatprep.subr.bf16.mxu1 %v738_v0  ;;  %v541_v27 = vpack.c.bf16 %v87_v23, %v86_v22  ;;  %v89_v29 = vld [vmem:[#allocation5 + $0x58] sm:$0xff]  ;;  %v562_v30 = vpack.c.bf16 %v179_v26, %v178_v25  ;;  %v180_v31 = vld [vmem:[#allocation7 + $0x40] sm:$0xff]  ;;  %v181_v32 = vld [vmem:[#allocation7 + $0x48] sm:$0xff] }
  0x51   :  { %533 = vmatpush3.bf16.msra.mxu0 %v532_v7  ;;  %v544_v33 = vpack.c.bf16 %v89_v29, %v88_v28  ;;  %v90_v34 = vld [vmem:[#allocation5 + $0x60] sm:$0xff]  ;;  %v91_v35 = vld [vmem:[#allocation5 + $0x68] sm:$0xff]  ;;  %v565_v36 = vpack.c.bf16 %v181_v32, %v180_v31  ;;  %v92_v38 = vld [vmem:[#allocation5 + $0x70] sm:$0xff]  ;;  %p710_p8 = pnand %p709_p7, %p703_p4 }
  0x52   :  { %534 = vmatprep.subr.bf16.mxu0 %v738_v0  ;;  %v547_v37 = vpack.c.bf16 %v91_v35, %v90_v34  ;;  %v93_v39 = vld [vmem:[#allocation5 + $0x78] sm:$0xff]  ;;  %v182_v42 = vld [vmem:[#allocation7 + $0x50] sm:$0xff]  ;;  %v184_v45 = vld [vmem:[#allocation7 + $0x60] sm:$0xff] }
  0x53   :  { %557 = vmatpush3.bf16.msra.mxu1 %v556_v18  ;;  %v550_v40 = vpack.c.bf16 %v93_v39, %v92_v38  ;;  %v77_v41 = vld [vmem:[#allocation2] sm:$0xff]  ;;  %v185_v46 = vld [vmem:[#allocation7 + $0x68] sm:$0xff]  ;;  %v186_v48 = vld [vmem:[#allocation7 + $0x70] sm:$0xff] }
  0x54   :  { %558 = vmatprep.subr.bf16.mxu1 %v738_v0  ;;  %v183_v43 = vld [vmem:[#allocation7 + $0x58] sm:$0xff]  ;;  %v571_v47 = vpack.c.bf16 %v185_v46, %v184_v45  ;;  %v266_v51 = vld [vmem:[#allocation8] sm:$0xff]  ;;  %v267_v52 = vld [vmem:[#allocation8 + $0x8] sm:$0xff] }
  0x55   :  { %536 = vmatpush3.bf16.msra.mxu0 %v535_v14  ;;  %v568_v44 = vpack.c.bf16 %v183_v43, %v182_v42  ;;  %v187_v49 = vld [vmem:[#allocation7 + $0x78] sm:$0xff]  ;;  %v268_v53 = vld [vmem:[#allocation8 + $0x10] sm:$0xff]  ;;  %v577_v54 = vpack.c.bf16 %v267_v52, %v266_v51  ;;  %v270_v57 = vld [vmem:[#allocation8 + $0x20] sm:$0xff] }
  0x56   :  { %537 = vmatprep.subr.bf16.mxu0 %v738_v0  ;;  %v574_v50 = vpack.c.bf16 %v187_v49, %v186_v48  ;;  %v269_v55 = vld [vmem:[#allocation8 + $0x18] sm:$0xff]  ;;  %v271_v58 = vld [vmem:[#allocation8 + $0x28] sm:$0xff]  ;;  %v272_v60 = vld [vmem:[#allocation8 + $0x30] sm:$0xff] }
  0x57   :  { %560 = vmatpush3.bf16.msra.mxu1 %v559_v24  ;;  %v580_v56 = vpack.c.bf16 %v269_v55, %v268_v53  ;;  %v583_v59 = vpack.c.bf16 %v271_v58, %v270_v57  ;;  %v273_v61 = vld [vmem:[#allocation8 + $0x38] sm:$0xff]  ;;  %v274_v63 = vld [vmem:[#allocation8 + $0x40] sm:$0xff]  ;;  %v276_v8 = vld [vmem:[#allocation8 + $0x50] sm:$0xff] }
  0x58   :  { %561 = vmatprep.subr.bf16.mxu1 %v738_v0  ;;  %v586_v62 = vpack.c.bf16 %v273_v61, %v272_v60  ;;  %v370_v3 = vld [vmem:[%s884_s2] ss:$0 sm:$0xff]  ;;  %v278_v11 = vld [vmem:[#allocation8 + $0x60] sm:$0xff]  ;;  %v279_v12 = vld [vmem:[#allocation8 + $0x68] sm:$0xff] }
  0x59   :  { %539 = vmatpush3.bf16.msra.mxu0 %v538_v21  ;;  %v277_v9 = vld [vmem:[#allocation8 + $0x58] sm:$0xff]  ;;  %v595_v13 = vpack.c.bf16 %v279_v12, %v278_v11  ;;  %v280_v14 = vld [vmem:[#allocation8 + $0x70] sm:$0xff] }
  0x5a   :  { %540 = vmatprep.subr.bf16.mxu0 %v738_v0  ;;  %v592_v10 = vpack.c.bf16 %v277_v9, %v276_v8  ;;  %v281_v15 = vld [vmem:[#allocation8 + $0x78] sm:$0xff] }
  0x5b   :  { %563 = vmatpush3.bf16.msra.mxu1 %v562_v30  ;;  %v598_v16 = vpack.c.bf16 %v281_v15, %v280_v14  ;;  %v371_v17 = vld [vmem:[%s886_s4] ss:$0 sm:$0xff] }
  0x5c   :  { %564 = vmatprep.subr.bf16.mxu1 %v738_v0 }
  0x5d   :  { %542 = vmatpush3.bf16.msra.mxu0 %v541_v27 }
  0x5e   :  { %543 = vmatprep.subr.bf16.mxu0 %v738_v0 }
  0x5f   :  { %566 = vmatpush3.bf16.msra.mxu1 %v565_v36 }
  0x60   :  { %567 = vmatprep.subr.bf16.mxu1 %v738_v0 }
  0x61   :  { %545 = vmatpush3.bf16.msra.mxu0 %v544_v33 }
  0x62   :  { %546 = vmatprep.subr.bf16.mxu0 %v738_v0 }
  0x63   :  { %569 = vmatpush3.bf16.msra.mxu1 %v568_v44 }
  0x64   :  { %570 = vmatprep.subr.bf16.mxu1 %v738_v0 }
  0x65   :  { %548 = vmatpush3.bf16.msra.mxu0 %v547_v37 }
  0x66   :  { %549 = vmatprep.subr.bf16.mxu0 %v738_v0 }
  0x67   :  { %572 = vmatpush3.bf16.msra.mxu1 %v571_v47 }
  0x68   :  { %573 = vmatprep.subr.bf16.mxu1 %v738_v0 }
  0x69   :  { %551 = vmatpush3.bf16.msra.mxu0 %v550_v40 }
  0x6a   :  { %576 = vmatprep.subr.bf16.mxu0 %v738_v0 }
  0x6b   :  { %575 = vmatpush3.bf16.msra.mxu1 %v574_v50 }
  0x6c   :  { %456 = vmatmul.mubr.f32.vlgmr.msra.gmra.mrb[0].mxu0 %v77_v41 }
  0x6d   :  { %525 = vmatprep.mubr.msk.f32.mxu0 %vm739_vm0, %v740_v1  ;;  %578 = vmatpush3.bf16.msra.mxu0 %v577_v54  ;;  %v275_v1 = vld [vmem:[#allocation8 + $0x48] sm:$0xff] }
  0x6e   :  { %579 = vmatprep.subr.bf16.mxu0 %v738_v0  ;;  %v589_v2 = vpack.c.bf16 %v275_v1, %v274_v63 }
  0x71   :  { %581 = vmatpush3.bf16.msra.mxu0 %v580_v56 }
  0x72   :  { %582 = vmatprep.subr.bf16.mxu0 %v738_v0 }
  0x75   :  { %584 = vmatpush3.bf16.msra.mxu0 %v583_v59 }
  0x76   :  { %585 = vmatprep.subr.bf16.mxu0 %v738_v0 }
  0x79   :  { %587 = vmatpush3.bf16.msra.mxu0 %v586_v62 }
  0x7a   :  { %588 = vmatprep.subr.bf16.mxu0 %v738_v0 }
  0x7d   :  { %590 = vmatpush3.bf16.msra.mxu0 %v589_v2 }
  0x7e   :  { %591 = vmatprep.subr.bf16.mxu0 %v738_v0 }
  0x81   :  { %593 = vmatpush3.bf16.msra.mxu0 %v592_v10 }
  0x82   :  { %594 = vmatprep.subr.bf16.mxu0 %v738_v0 }
  0x85   :  { %596 = vmatpush3.bf16.msra.mxu0 %v595_v13 }
  0x86   :  { %597 = vmatprep.subr.bf16.mxu0 %v738_v0 }
  0x89   :  { %599 = vmatpush3.bf16.msra.mxu0 %v598_v16 }
 0x13f   :  { %v167_v4 = vpop.f32.mrb[0].mxu0 }
 0x140   :  { %v168_v5 = vadd.f32 %v370_v3, %v167_v4  ;;  %v457_v6 = vpop.f32.mrb[1].mxu0 }
 0x142   :  { %610 = vtanh.f32 %v168_v5 }
 0x14c   :  { %v611_v7 = vpop.eup %610 }
 0x14d   :  { %491 = vmatmul.mubr.f32.vlgmr.msra.gmra.mrb[0].mxu1 %v611_v7 }
 0x220   :  { %v261_v18 = vpop.f32.mrb[0].mxu1 }
 0x221   :  { %v262_v19 = vadd.f32 %v371_v17, %v261_v18  ;;  %v492_v20 = vpop.f32.mrb[1].mxu1 }
 0x223   :  { %612 = vtanh.f32 %v262_v19 }
 0x22d   :  { %v613_v21 = vpop.eup %612 }
 0x22e   :  { %526 = vmatmul.mubr.f32.vlgmr.msra.gmra.mrb[2].mxu0 %v613_v21 }
 0x301   :  { %v348_v22 = vpop.f32.mrb[2].mxu0 }
 0x302   :  { %352 = vst [vmem:[#allocation10] sm:$0xff] %v348_v22  ;;  %v527_v23 = vpop.f32.mrb[3].mxu0 }
 0x303   :  { %713 = shalt.err (!%p710_p8)
}
 0x304   :  { %s714_s25 = scalar_lea.hbm %s888_s6, 128 }
 0x305   :  { %p715_p9 = scmp.ne.s32.totalorder %s888_s6, %s714_s25  ;;  %p718_p10 = scmp.lt.u32.totalorder %s714_s25, %s888_s6 }
 0x307   :  { %p720_p11 = pnand %p718_p10, %p715_p9 }
 0x309   :  { %723 = shalt.err (!%p720_p11)
}
 0x30a   :  { %362 = dma.vmem_to_hbm [thread:$0]  %s360_s22, 128, %s888_s6, [#allocation4]  }
 0x30b   :  { %730 = dma.done.wait [#allocation4], 128  }
 0x30c   :  { %731 = vsyncadd [#allocation4], 4294967168 }
 0x30d   :  { %366 = vsyncpa [#allocation3], 1 }
 0x30e   :  { %367 = vsyncpa [#allocation6], 1 }
 0x30f   :  { %368 = vsyncpa [#allocation9], 1 }
 0x310   :  { %369 = vsyncpa [#allocation4], 1 }

</bundles_post_ra>
